<compile_context>
chip_gen: v7x
topology: tpu7x:2x2x1
jax: 0.10.0
libtpu: 0.0.40
codegen_flags: <defaults>
</compile_context>

<pallas_src>
import functools

import jax
import jax.numpy as jnp
from jax.experimental import pallas as pl
from jax.experimental.pallas import tpu as pltpu


TM_MAX = 512     # max A_hat row tile
TK_MAX = 2048    # max A_hat column (reduction) tile
LANES = 128


def _round_up(x, m):
    return (x + m - 1) // m * m


# ---------------------------------------------------------------------------
# Fused GCN layer kernel:
#   Z = ReLU(LayerNorm(A_hat @ (X @ W) + b))
#   grid = (row tiles i, reduction tiles k)  -- reduction last, f32 accumulator.
# ---------------------------------------------------------------------------
def gcn_layer_kernel(a_ref, x_ref, w_ref, b_ref, g_ref, beta_ref, out_ref,
                     acc_ref, *, c_true, eps):
    k = pl.program_id(1)

    @pl.when(k == 0)
    def _():
        acc_ref[...] = jnp.zeros_like(acc_ref)

    # Fused feature transform for this reduction block: H_k = X_k @ W.
    h_k = jnp.dot(x_ref[...], w_ref[...], preferred_element_type=jnp.float32)
    acc_ref[...] += jnp.dot(a_ref[...], h_k.astype(jnp.bfloat16),
                            preferred_element_type=jnp.float32)

    @pl.when(k == pl.num_programs(1) - 1)
    def _():
        h = acc_ref[...] + b_ref[...]
        cp = h.shape[-1]
        inv_c = 1.0 / float(c_true)
        # Padded lanes of acc+b are exactly zero (W/b padded with zeros),
        # so the mean needs no mask; mask only the centered values.
        mu = jnp.sum(h, axis=-1, keepdims=True) * inv_c
        mask = jax.lax.broadcasted_iota(jnp.int32, (1, cp), 1) < c_true
        d = jnp.where(mask, h - mu, 0.0)
        var = jnp.sum(d * d, axis=-1, keepdims=True) * inv_c
        y = d * jax.lax.rsqrt(var + eps) * g_ref[...] + beta_ref[...]
        out_ref[...] = jnp.maximum(y, 0.0).astype(out_ref.dtype)


def gcn_layer(a_pad, x_pad, w, bias, gamma, beta, *,
              c_true, tm, tk, out_dtype, eps=1e-5):
    np_ = a_pad.shape[0]
    cin_p = x_pad.shape[1]
    cp = w.shape[1]
    out_bytes = jnp.dtype(out_dtype).itemsize

    # VMEM budget (double-buffered streams + resident blocks + accumulator).
    need = (2 * tm * tk * 2          # A_hat tile (bf16)
            + 2 * tk * cin_p * 2     # X tile (bf16)
            + 2 * cin_p * cp * 2     # W block (bf16)
            + 6 * cp * 4             # bias / gamma / beta
            + tm * cp * 4            # f32 accumulator
            + 2 * tm * cp * out_bytes)
    vmem_limit = int(min(max(need + (2 << 20), 16 << 20), 56 << 20))

    n_row_tiles = np_ // tm
    kernel = functools.partial(gcn_layer_kernel, c_true=c_true, eps=eps)
    return pl.pallas_call(
        kernel,
        out_shape=jax.ShapeDtypeStruct((np_, cp), out_dtype),
        grid=(n_row_tiles, np_ // tk),
        in_specs=[
            pl.BlockSpec((tm, tk), lambda i, k: (i, k)),      # A_hat tile
            pl.BlockSpec((tk, cin_p), lambda i, k: (k, 0)),   # X rows for block k
            pl.BlockSpec((cin_p, cp), lambda i, k: (0, 0)),   # W (resident)
            pl.BlockSpec((1, cp), lambda i, k: (0, 0)),       # bias
            pl.BlockSpec((1, cp), lambda i, k: (0, 0)),       # LN gamma
            pl.BlockSpec((1, cp), lambda i, k: (0, 0)),       # LN beta
        ],
        out_specs=pl.BlockSpec((tm, cp), lambda i, k: (i, 0)),
        scratch_shapes=[pltpu.VMEM((tm, cp), jnp.float32)],
        compiler_params=pltpu.CompilerParams(
            dimension_semantics=("parallel", "arbitrary"),
            vmem_limit_bytes=vmem_limit),
        cost_estimate=pl.CostEstimate(
            flops=2 * np_ * np_ * cp + 2 * np_ * cin_p * cp * n_row_tiles,
            transcendentals=np_,
            bytes_accessed=np_ * np_ * 2 + n_row_tiles * np_ * cin_p * 2
            + cin_p * cp * 2 + np_ * cp * out_bytes),
    )(a_pad, x_pad, w, bias, gamma, beta)


# ---------------------------------------------------------------------------
# Plain-JAX glue
# ---------------------------------------------------------------------------
def build_norm_adj_padded(edge_index, num_nodes, np_):
    """GCN-normalized dense adjacency, built directly at padded size in bf16."""
    src, dst = edge_index[0], edge_index[1]
    a = jnp.zeros((np_, np_), jnp.float32).at[dst, src].add(1.0)
    # add_remaining_self_loops: only add a self-loop where one is missing.
    idx = jnp.arange(np_)
    diag = a[idx, idx]
    a = a.at[idx, idx].set(jnp.where((idx < num_nodes) & (diag == 0.0),
                                     1.0, diag))
    deg = jnp.sum(a, axis=1)
    dinv = jnp.where(deg > 0.0, jax.lax.rsqrt(jnp.maximum(deg, 1.0)), 0.0)
    return (dinv[:, None] * a * dinv[None, :]).astype(jnp.bfloat16)


def _pad2(x, r, c, dtype):
    return jnp.pad(x, ((0, r - x.shape[0]), (0, c - x.shape[1]))).astype(dtype)


def _pad_row(v, c):
    v = v.reshape(1, -1)
    return jnp.pad(v, ((0, 0), (0, c - v.shape[1]))).astype(jnp.float32)


def _choose_tiles(n):
    """Right-size node padding and tiles.  tm % 8 == 0, tk % 128 == 0,
    and both divide np_."""
    np_ = _round_up(n, LANES)
    if np_ > TK_MAX:
        np_ = _round_up(n, TK_MAX)
        tk = TK_MAX
    else:
        tk = np_
    if np_ <= TM_MAX:
        tm = np_
    elif np_ % 512 == 0:
        tm = 512
    elif np_ % 256 == 0:
        tm = 256
    else:
        tm = 128
    return np_, tm, tk


def encoder_forward(x, edge_index, params):
    """ReLU(LN(A ReLU(LN(A (X W1) + b1)) W2 + b2)) — inference forward pass."""
    # TODO(synk): F.dropout is identity at inference; training-mode masks omitted.
    n, c_in = x.shape
    c_hid = params["w1"].shape[1]       # 2 * out_channels
    c_out = params["w2"].shape[1]       # out_channels

    np_, tm, tk = _choose_tiles(n)
    cin_p = _round_up(c_in, LANES)
    c1_p = _round_up(c_hid, LANES)
    c2_p = _round_up(c_out, LANES)

    a_pad = build_norm_adj_padded(edge_index, n, np_)
    x_pad = _pad2(x, np_, cin_p, jnp.bfloat16)

    w1 = _pad2(params["w1"], cin_p, c1_p, jnp.bfloat16)
    w2 = _pad2(params["w2"], c1_p, c2_p, jnp.bfloat16)
    b1, g1, be1 = (_pad_row(params[k], c1_p) for k in ("b1", "g1", "be1"))
    b2, g2, be2 = (_pad_row(params[k], c2_p) for k in ("b2", "g2", "be2"))

    # --- GCN layer 1 (fused transform+aggregate+LN+ReLU), bf16 output ---
    z1 = gcn_layer(a_pad, x_pad, w1, b1, g1, be1,
                   c_true=c_hid, tm=tm, tk=tk, out_dtype=jnp.bfloat16)

    # --- GCN layer 2, f32 output ---
    z2 = gcn_layer(a_pad, z1, w2, b2, g2, be2,
                   c_true=c_out, tm=tm, tk=tk, out_dtype=jnp.float32)

    return z2[:n, :c_out]


if __name__ == "__main__":
    N, C_IN, C_OUT = 16, 32, 16          # nodes, in_channels, out_channels
    key = jax.random.PRNGKey(0)
    k_w1, k_w2, k_x = jax.random.split(key, 3)

    params = {
        "w1": 0.1 * jax.random.normal(k_w1, (C_IN, 2 * C_OUT), jnp.float32),
        "b1": jnp.zeros((2 * C_OUT,), jnp.float32),
        "g1": jnp.ones((2 * C_OUT,), jnp.float32),
        "be1": jnp.zeros((2 * C_OUT,), jnp.float32),
        "w2": 0.1 * jax.random.normal(k_w2, (2 * C_OUT, C_OUT), jnp.float32),
        "b2": jnp.zeros((C_OUT,), jnp.float32),
        "g2": jnp.ones((C_OUT,), jnp.float32),
        "be2": jnp.zeros((C_OUT,), jnp.float32),
    }

    x = jax.random.normal(k_x, (N, C_IN), jnp.float32)

    # Deterministic ring graph, both directions: edge_index shape (2, 2N).
    src = jnp.arange(N)
    dst = (src + 1) % N
    edge_index = jnp.stack([jnp.concatenate([src, dst]),
                            jnp.concatenate([dst, src])]).astype(jnp.int32)

    out = encoder_forward(x, edge_index, params)
    jax.block_until_ready(out)
    assert out.shape == (N, C_OUT)
    assert bool(jnp.all(jnp.isfinite(out)))
    print("KERNEL_OK")
</pallas_src>

<mosaic_0001>
module attributes {stable_mosaic.version = 11 : i64} {
  func.func @gcn_layer_kernel(%arg0: i32, %arg1: i32, %arg2: memref<128x128xbf16, #tpu.memory_space<vmem>>, %arg3: memref<128x128xbf16, #tpu.memory_space<vmem>>, %arg4: memref<128x128xbf16, #tpu.memory_space<vmem>>, %arg5: memref<1x128xf32, #tpu.memory_space<vmem>>, %arg6: memref<1x128xf32, #tpu.memory_space<vmem>>, %arg7: memref<1x128xf32, #tpu.memory_space<vmem>>, %arg8: memref<128x128xbf16, #tpu.memory_space<vmem>>, %arg9: memref<128x128xf32, #tpu.memory_space<vmem>>) attributes {dimension_semantics = [#tpu.dimension_semantics<parallel>, #tpu.dimension_semantics<arbitrary>], iteration_bounds = array<i64: 1, 1>, scalar_prefetch = 0 : i64, scratch_operands = 1 : i64, tpu.core_type = #tpu.core_type<tc>, window_params = [{transform_indices = @transform_0, window_bounds = array<i64: 128, 128>}, {transform_indices = @transform_1, window_bounds = array<i64: 128, 128>}, {pipeline_mode = #tpu.pipeline_mode<synchronous>, transform_indices = @transform_2, window_bounds = array<i64: 128, 128>}, {pipeline_mode = #tpu.pipeline_mode<synchronous>, transform_indices = @transform_3, window_bounds = array<i64: 1, 128>}, {pipeline_mode = #tpu.pipeline_mode<synchronous>, transform_indices = @transform_4, window_bounds = array<i64: 1, 128>}, {pipeline_mode = #tpu.pipeline_mode<synchronous>, transform_indices = @transform_5, window_bounds = array<i64: 1, 128>}, {transform_indices = @transform_6, window_bounds = array<i64: 128, 128>}]} {
    %c0_i32 = arith.constant 0 : i32
    %0 = arith.cmpi eq, %arg1, %c0_i32 : i32
    %1 = arith.extui %0 : i1 to i32
    %c0_i32_0 = arith.constant 0 : i32
    %2 = arith.cmpi ne, %1, %c0_i32_0 : i32
    scf.if %2 {
      %cst_13 = arith.constant 0.000000e+00 : f32
      %15 = vector.broadcast %cst_13 : f32 to vector<128x128xf32>
      %c0_14 = arith.constant 0 : index
      %c0_15 = arith.constant 0 : index
      %16 = vector.load %arg9[%c0_14, %c0_15] : memref<128x128xf32, #tpu.memory_space<vmem>>, vector<128x128xf32>
      tpu.vector_store %arg9[%c0_14, %c0_15], %15 {strides = array<i32>} : memref<128x128xf32, #tpu.memory_space<vmem>>, vector<128x128xf32>,
    } else {
    }
    %c0 = arith.constant 0 : index
    %c0_1 = arith.constant 0 : index
    %3 = vector.load %arg3[%c0, %c0_1] : memref<128x128xbf16, #tpu.memory_space<vmem>>, vector<128x128xbf16>
    %c0_2 = arith.constant 0 : index
    %c0_3 = arith.constant 0 : index
    %4 = vector.load %arg4[%c0_2, %c0_3] : memref<128x128xbf16, #tpu.memory_space<vmem>>, vector<128x128xbf16>
    %cst = arith.constant dense<0.000000e+00> : vector<128x128xf32>
    %5 = tpu.matmul %3, %4, %cst {dimension_numbers = #tpu.dot_dimension_numbers<[1], [0], [0], [1], [0, 0, 1, 1], [], []>} : vector<128x128xbf16>, vector<128x128xbf16>, vector<128x128xf32> -> vector<128x128xf32>
    %c0_4 = arith.constant 0 : index
    %c0_5 = arith.constant 0 : index
    %6 = vector.load %arg9[%c0_4, %c0_5] : memref<128x128xf32, #tpu.memory_space<vmem>>, vector<128x128xf32>
    %c0_6 = arith.constant 0 : index
    %c0_7 = arith.constant 0 : index
    %7 = vector.load %arg2[%c0_6, %c0_7] : memref<128x128xbf16, #tpu.memory_space<vmem>>, vector<128x128xbf16>
    %8 = arith.truncf %5 : vector<128x128xf32> to vector<128x128xbf16>
    %cst_8 = arith.constant dense<0.000000e+00> : vector<128x128xf32>
    %9 = tpu.matmul %7, %8, %cst_8 {dimension_numbers = #tpu.dot_dimension_numbers<[1], [0], [0], [1], [0, 0, 1, 1], [], []>} : vector<128x128xbf16>, vector<128x128xbf16>, vector<128x128xf32> -> vector<128x128xf32>
    %10 = arith.addf %6, %9 : vector<128x128xf32>
    %c0_9 = arith.constant 0 : index
    %c0_10 = arith.constant 0 : index
    %11 = vector.load %arg9[%c0_9, %c0_10] : memref<128x128xf32, #tpu.memory_space<vmem>>, vector<128x128xf32>
    tpu.vector_store %arg9[%c0_9, %c0_10], %10 {strides = array<i32>} : memref<128x128xf32, #tpu.memory_space<vmem>>, vector<128x128xf32>,
    %c0_i32_11 = arith.constant 0 : i32
    %12 = arith.cmpi eq, %arg1, %c0_i32_11 : i32
    %13 = arith.extui %12 : i1 to i32
    %c0_i32_12 = arith.constant 0 : i32
    %14 = arith.cmpi ne, %13, %c0_i32_12 : i32
    scf.if %14 {
      %c0_13 = arith.constant 0 : index
      %c0_14 = arith.constant 0 : index
      %15 = vector.load %arg9[%c0_13, %c0_14] : memref<128x128xf32, #tpu.memory_space<vmem>>, vector<128x128xf32>
      %c0_15 = arith.constant 0 : index
      %c0_16 = arith.constant 0 : index
      %16 = vector.load %arg5[%c0_15, %c0_16] : memref<1x128xf32, #tpu.memory_space<vmem>>, vector<1x128xf32>
      %17 = vector.broadcast %16 : vector<1x128xf32> to vector<128x128xf32>
      %18 = arith.addf %15, %17 : vector<128x128xf32>
      %cst_17 = arith.constant dense<0.000000e+00> : vector<128xf32>
      %19 = vector.multi_reduction <add>, %18, %cst_17 [1] : vector<128x128xf32> to vector<128xf32>
      %20 = vector.shape_cast %19 : vector<128xf32> to vector<128x1xf32>
      %cst_18 = arith.constant 3.125000e-02 : f32
      %21 = vector.broadcast %cst_18 : f32 to vector<128x1xf32>
      %22 = arith.mulf %20, %21 : vector<128x1xf32>
      %23 = tpu.iota {dimensions = array<i32: 1>} : vector<1x128xi32>
      %c32_i32 = arith.constant 32 : i32
      %24 = vector.broadcast %c32_i32 : i32 to vector<1x128xi32>
      %25 = arith.cmpi slt, %23, %24 : vector<1x128xi32>
      %26 = vector.broadcast %22 : vector<128x1xf32> to vector<128x128xf32>
      %27 = arith.subf %18, %26 : vector<128x128xf32>
      %cst_19 = arith.constant 0.000000e+00 : f32
      %28 = vector.shape_cast %25 : vector<1x128xi1> to vector<1x128xi1>
      %29 = vector.broadcast %28 : vector<1x128xi1> to vector<128x128xi1>
      %30 = vector.broadcast %cst_19 : f32 to vector<128x128xf32>
      %31 = arith.select %29, %27, %30 : vector<128x128xi1>, vector<128x128xf32>
      %32 = arith.mulf %31, %31 : vector<128x128xf32>
      %cst_20 = arith.constant dense<0.000000e+00> : vector<128xf32>
      %33 = vector.multi_reduction <add>, %32, %cst_20 [1] : vector<128x128xf32> to vector<128xf32>
      %34 = vector.shape_cast %33 : vector<128xf32> to vector<128x1xf32>
      %cst_21 = arith.constant 3.125000e-02 : f32
      %35 = vector.broadcast %cst_21 : f32 to vector<128x1xf32>
      %36 = arith.mulf %34, %35 : vector<128x1xf32>
      %cst_22 = arith.constant 9.99999974E-6 : f32
      %37 = vector.broadcast %cst_22 : f32 to vector<128x1xf32>
      %38 = arith.addf %36, %37 : vector<128x1xf32>
      %39 = math.rsqrt %38 : vector<128x1xf32>
      %40 = vector.broadcast %39 : vector<128x1xf32> to vector<128x128xf32>
      %41 = arith.mulf %31, %40 : vector<128x128xf32>
      %c0_23 = arith.constant 0 : index
      %c0_24 = arith.constant 0 : index
      %42 = vector.load %arg6[%c0_23, %c0_24] : memref<1x128xf32, #tpu.memory_space<vmem>>, vector<1x128xf32>
      %43 = vector.broadcast %42 : vector<1x128xf32> to vector<128x128xf32>
      %44 = arith.mulf %41, %43 : vector<128x128xf32>
      %c0_25 = arith.constant 0 : index
      %c0_26 = arith.constant 0 : index
      %45 = vector.load %arg7[%c0_25, %c0_26] : memref<1x128xf32, #tpu.memory_space<vmem>>, vector<1x128xf32>
      %46 = vector.broadcast %45 : vector<1x128xf32> to vector<128x128xf32>
      %47 = arith.addf %44, %46 : vector<128x128xf32>
      %cst_27 = arith.constant 0.000000e+00 : f32
      %48 = vector.broadcast %cst_27 : f32 to vector<128x128xf32>
      %49 = arith.maximumf %47, %48 : vector<128x128xf32>
      %50 = arith.truncf %49 : vector<128x128xf32> to vector<128x128xbf16>
      %c0_28 = arith.constant 0 : index
      %c0_29 = arith.constant 0 : index
      %51 = vector.load %arg8[%c0_28, %c0_29] : memref<128x128xbf16, #tpu.memory_space<vmem>>, vector<128x128xbf16>
      tpu.vector_store %arg8[%c0_28, %c0_29], %50 {strides = array<i32>} : memref<128x128xbf16, #tpu.memory_space<vmem>>, vector<128x128xbf16>,
    } else {
    }
    return
  }
  func.func @transform_0(%arg0: i32, %arg1: i32) -> (i32, i32) {
    %c0_i32 = arith.constant 0 : i32
    return %arg0, %arg1 : i32, i32
  }
  func.func @transform_1(%arg0: i32, %arg1: i32) -> (i32, i32) {
    %c0_i32 = arith.constant 0 : i32
    %c0_i32_0 = arith.constant 0 : i32
    return %arg1, %c0_i32 : i32, i32
  }
  func.func @transform_2(%arg0: i32, %arg1: i32) -> (i32, i32) {
    %c0_i32 = arith.constant 0 : i32
    %c0_i32_0 = arith.constant 0 : i32
    %c0_i32_1 = arith.constant 0 : i32
    return %c0_i32, %c0_i32_0 : i32, i32
  }
  func.func @transform_3(%arg0: i32, %arg1: i32) -> (i32, i32) {
    %c0_i32 = arith.constant 0 : i32
    %c0_i32_0 = arith.constant 0 : i32
    %c0_i32_1 = arith.constant 0 : i32
    return %c0_i32, %c0_i32_0 : i32, i32
  }
  func.func @transform_4(%arg0: i32, %arg1: i32) -> (i32, i32) {
    %c0_i32 = arith.constant 0 : i32
    %c0_i32_0 = arith.constant 0 : i32
    %c0_i32_1 = arith.constant 0 : i32
    return %c0_i32, %c0_i32_0 : i32, i32
  }
  func.func @transform_5(%arg0: i32, %arg1: i32) -> (i32, i32) {
    %c0_i32 = arith.constant 0 : i32
    %c0_i32_0 = arith.constant 0 : i32
    %c0_i32_1 = arith.constant 0 : i32
    return %c0_i32, %c0_i32_0 : i32, i32
  }
  func.func @transform_6(%arg0: i32, %arg1: i32) -> (i32, i32) {
    %c0_i32 = arith.constant 0 : i32
    %c0_i32_0 = arith.constant 0 : i32
    return %arg0, %c0_i32 : i32, i32
  }
}

</mosaic_0001>

<bundles_post_ra>
// kernel: tpu_custom_call.1
= control target key start
LH: loop header
LB: loop body
LE: loop exit
PB: predicated region body
PF: predicated region fallthrough
CT: control target
= control target key end

     0   :  { %11 = vsyncpa [#allocation4], 0  ;;  %s1605_s0 = inlined_call_operand.hbm [shape: bf16[128,128], index: 0, kind: input, shape index: {}]   ;;  %s1606_s1 = inlined_call_operand.hbm [shape: bf16[128,128], index: 1, kind: input, shape index: {}]   ;;  %s1607_s2 = inlined_call_operand.hbm [shape: bf16[128,128], index: 2, kind: input, shape index: {}]   ;;  %s1608_s3 = inlined_call_operand.vmem [shape: f32[1,128], index: 3, kind: input, shape index: {}]   ;;  %s1609_s4 = inlined_call_operand.vmem [shape: f32[1,128], index: 4, kind: input, shape index: {}]   ;;  %s1610_s5 = inlined_call_operand.vmem [shape: f32[1,128], index: 5, kind: input, shape index: {}]   ;;  %s1611_s6 = inlined_call_operand.hbm [shape: bf16[128,128], index: 6, kind: output, shape index: {}]  }
   0x1   :  { %12 = vsyncpa [#allocation7], 0 }
   0x2   :  { %13 = vsyncpa [#allocation5], 0  ;;  %s1285_s21 = smov [#allocation6]   ;;  %s1286_s23 = smov [#allocation3]  }
   0x3   :  { %s31_s22 = sshll.u32 %s1285_s21, 4  ;;  %s19_s24 = sshll.u32 %s1286_s23, 4  ;;  %s32_s22 = int_to_ptr.vmem [resolvable:$true] %s31_s22  ;;  %s1326_s24 = int_to_ptr.vmem [resolvable:$true] %s19_s24 }
   0x4   :  { %s1191_s27 = scalar_lea.hbm %s1606_s1, 1024 }
   0x5   :  { %p1192_p0 = scmp.ne.s32.totalorder %s1606_s1, %s1191_s27  ;;  %p1195_p1 = scmp.lt.u32.totalorder %s1191_s27, %s1606_s1 }
   0x7   :  { %p1197_p2 = pnand %p1195_p1, %p1192_p0 }
   0x9   :  { %1200 = shalt.err (!%p1197_p2)
}
   0xa   :  { %s1201_s8 = scalar_lea.vmem %s32_s22, 1024  ;;  %p1206_p4 = scmp.lt.s32.totalorder %s32_s22, %s32_s22 }
   0xb   :  { %p1202_p3 = scmp.ne.s32.totalorder %s32_s22, %s1201_s8  ;;  %p1207_p5 = scmp.lt.s32.totalorder %s1201_s8, %s1201_s8 }
   0xd   :  { %p1208_p6 = por %p1207_p5, %p1206_p4 }
   0xf   :  { %p1209_p7 = pnand %p1208_p6, %p1202_p3 }
  0x11   :  { %1212 = shalt.err (!%p1209_p7)
}
  0x12   :  { %s1287_s9 = smov 64   ;;  %s1288_s10 = smov 4  }
  0x13   :  { %37 = dma.hbm_to_vmem [thread:$0]  %s1606_s1, 1024, %s32_s22, [#allocation7], %s1287_s9, %s1287_s9, %s1288_s10  }
  0x14   :  { %s1213_s15 = scalar_lea.hbm %s1605_s0, 1024 }
  0x15   :  { %p1214_p8 = scmp.ne.s32.totalorder %s1605_s0, %s1213_s15  ;;  %p1217_p9 = scmp.lt.u32.totalorder %s1213_s15, %s1605_s0 }
  0x17   :  { %p1219_p10 = pnand %p1217_p9, %p1214_p8 }
  0x19   :  { %1222 = shalt.err (!%p1219_p10)
}
  0x1a   :  { %s1223_s20 = scalar_lea.vmem %s1326_s24, 1024  ;;  %p1228_p12 = scmp.lt.s32.totalorder %s1326_s24, %s1326_s24 }
  0x1b   :  { %p1224_p11 = scmp.ne.s32.totalorder %s1326_s24, %s1223_s20  ;;  %p1229_p13 = scmp.lt.s32.totalorder %s1223_s20, %s1223_s20 }
  0x1d   :  { %p1230_p0 = por %p1229_p13, %p1228_p12 }
  0x1f   :  { %p1231_p1 = pnand %p1230_p0, %p1224_p11 }
  0x21   :  { %1234 = shalt.err (!%p1231_p1)
}
  0x22   :  { %25 = dma.hbm_to_vmem [thread:$0]  %s1605_s0, 1024, %s1326_s24, [#allocation4], %s1287_s9, %s1287_s9, %s1288_s10  }
  0x23   :  { %s1289_s22 = smov [#allocation8]   ;;  %s1235_s27 = scalar_lea.hbm %s1607_s2, 1024 }
  0x24   :  { %s43_s23 = sshll.u32 %s1289_s22, 4  ;;  %p1236_p2 = scmp.ne.s32.totalorder %s1607_s2, %s1235_s27  ;;  %s44_s23 = int_to_ptr.vmem [resolvable:$true] %s43_s23 }
  0x25   :  { %p1239_p3 = scmp.lt.u32.totalorder %s1235_s27, %s1607_s2 }
  0x27   :  { %p1241_p4 = pnand %p1239_p3, %p1236_p2 }
  0x29   :  { %1244 = shalt.err (!%p1241_p4)
}
  0x2a   :  { %s1245_s8 = scalar_lea.vmem %s44_s23, 1024  ;;  %p1250_p6 = scmp.lt.s32.totalorder %s44_s23, %s44_s23 }
  0x2b   :  { %p1246_p5 = scmp.ne.s32.totalorder %s44_s23, %s1245_s8  ;;  %p1251_p7 = scmp.lt.s32.totalorder %s1245_s8, %s1245_s8 }
  0x2d   :  { %p1252_p8 = por %p1251_p7, %p1250_p6 }
  0x2f   :  { %p1253_p9 = pnand %p1252_p8, %p1246_p5 }
  0x31   :  { %1256 = shalt.err (!%p1253_p9)
}
  0x32   :  { %49 = dma.hbm_to_vmem [thread:$0]  %s1607_s2, 1024, %s44_s23, [#allocation7], %s1287_s9, %s1287_s9, %s1288_s10  }
  0x33   :  { %1279 = dma.done.wait [#allocation4], 1024  }
  0x34   :  { %1280 = vsyncadd [#allocation4], 4294966272 }
  0x35   :  { %1281 = dma.done.wait [#allocation7], 2048  }
  0x36   :  { %1282 = vsyncadd [#allocation7], 4294965248  ;;  %v1135_v0 = vld [vmem:[#allocation8] sm:$0xff]   ;;  %v1136_v1 = vld [vmem:[#allocation8 + $0x8] sm:$0xff]  }
  0x37   :  { %1065 = vmatprep.subr.bf16.mxu0 %v1135_v0  ;;  %v1137_v2 = vld [vmem:[#allocation8 + $0x10] sm:$0xff]   ;;  %v1138_v3 = vld [vmem:[#allocation8 + $0x18] sm:$0xff]   ;;  %v1143_v4 = vld [vmem:[#allocation6] sm:$0xff]  }
  0x38   :  { %1066 = vmatpush3.bf16.msra.mxu0 %v1135_v0  ;;  %1081 = vmatprep.mubr.bf16.mxu0 %v1143_v4  ;;  %v1139_v5 = vld [vmem:[#allocation8 + $0x20] sm:$0xff]   ;;  %v1140_v6 = vld [vmem:[#allocation8 + $0x28] sm:$0xff]   ;;  %v1141_v7 = vld [vmem:[#allocation8 + $0x30] sm:$0xff]  }
  0x39   :  { %1067 = vmatprep.subr.bf16.mxu0 %v1136_v1  ;;  %v1142_v8 = vld [vmem:[#allocation8 + $0x38] sm:$0xff]   ;;  %v1144_v9 = vld [vmem:[#allocation6 + $0x8] sm:$0xff]   ;;  %v1145_v10 = vld [vmem:[#allocation6 + $0x10] sm:$0xff]  }
  0x3a   :  { %v1146_v11 = vld [vmem:[#allocation6 + $0x18] sm:$0xff]   ;;  %v1147_v12 = vld [vmem:[#allocation6 + $0x20] sm:$0xff]   ;;  %v1148_v13 = vld [vmem:[#allocation6 + $0x28] sm:$0xff]  }
  0x3b   :  { %v1149_v14 = vld [vmem:[#allocation6 + $0x30] sm:$0xff]   ;;  %v1150_v15 = vld [vmem:[#allocation6 + $0x38] sm:$0xff]   ;;  %v1151_v16 = vld [vmem:[#allocation3] sm:$0xff]  }
  0x3c   :  { %1068 = vmatpush3.bf16.msra.mxu0 %v1136_v1  ;;  %1113 = vmatprep.mubr.bf16.mxu1 %v1151_v16  ;;  %v1152_v41 = vld [vmem:[#allocation3 + $0x8] sm:$0xff]   ;;  %v1153_v42 = vld [vmem:[#allocation3 + $0x10] sm:$0xff]   ;;  %v1154_v43 = vld [vmem:[#allocation3 + $0x18] sm:$0xff]  }
  0x3d   :  { %1069 = vmatprep.subr.bf16.mxu0 %v1137_v2  ;;  %v1155_v44 = vld [vmem:[#allocation3 + $0x20] sm:$0xff]   ;;  %v1156_v45 = vld [vmem:[#allocation3 + $0x28] sm:$0xff]   ;;  %v1157_v46 = vld [vmem:[#allocation3 + $0x30] sm:$0xff]  }
  0x3e   :  { %v1158_v47 = vld [vmem:[#allocation3 + $0x38] sm:$0xff]   ;;  %v951_v48 = vld [vmem:[%s1608_s3] ss:$0 sm:$0xff] }
  0x40   :  { %1070 = vmatpush3.bf16.msra.mxu0 %v1137_v2 }
  0x41   :  { %1071 = vmatprep.subr.bf16.mxu0 %v1138_v3 }
  0x44   :  { %1072 = vmatpush3.bf16.msra.mxu0 %v1138_v3 }
  0x45   :  { %1073 = vmatprep.subr.bf16.mxu0 %v1139_v5 }
  0x48   :  { %1074 = vmatpush3.bf16.msra.mxu0 %v1139_v5 }
  0x49   :  { %1075 = vmatprep.subr.bf16.mxu0 %v1140_v6 }
  0x4c   :  { %1076 = vmatpush3.bf16.msra.mxu0 %v1140_v6 }
  0x4d   :  { %1077 = vmatprep.subr.bf16.mxu0 %v1141_v7 }
  0x50   :  { %1078 = vmatpush3.bf16.msra.mxu0 %v1141_v7 }
  0x51   :  { %1079 = vmatprep.subr.bf16.mxu0 %v1142_v8 }
  0x54   :  { %1080 = vmatpush3.bf16.msra.mxu0 %v1142_v8 }
  0x57   :  { %1082 = vmatmul.mubr.bf16.vlgmr.msra.gmra.mrb[0].mxu0 %v1144_v9 }
  0x58   :  { %1085 = vmatprep.mubr.bf16.mxu0 %v1145_v10 }
  0x5f   :  { %1086 = vmatmul.mubr.bf16.gmra.mrb[4].mxu0 %v1146_v11 }
  0x60   :  { %1089 = vmatprep.mubr.bf16.mxu0 %v1147_v12 }
  0x67   :  { %1090 = vmatmul.mubr.bf16.gmra.mrb[8].mxu0 %v1148_v13 }
  0x68   :  { %1093 = vmatprep.mubr.bf16.mxu0 %v1149_v14 }
  0x6f   :  { %1094 = vmatmul.mubr.bf16.gmra.mrb[12].mxu0 %v1150_v15 }
 0x12a   :  { %v1083_v17 = vpop.f32.mrb[0].mxu0 }
 0x12b   :  { %v248_v18 = vpop.f32.mrb[1].mxu0 }
 0x12c   :  { %v1084_v19 = vpop.f32.mrb[2].mxu0 }
 0x12d   :  { %v344_v20 = vpack.c.bf16 %v1084_v19, %v1083_v17  ;;  %v251_v21 = vpop.f32.mrb[3].mxu0  ;;  %v618_v17 = vlaneseq }
 0x12e   :  { %v343_v22 = vpack.c.bf16 %v251_v21, %v248_v18 }
 0x12f   :  { %v1420_v18 = vand.u32 127, %v618_v17 }
 0x130   :  { %1097 = vmatprep.subr.bf16.mxu1 %v343_v22 }
 0x131   :  { %1098 = vmatpush3.bf16.msra.mxu1 %v343_v22  ;;  %vm620_vm0 = vcmp.lt.s32.totalorder %v1420_v18, 32 }
 0x132   :  { %v1087_v23 = vpop.f32.mrb[4].mxu0  ;;  %1099 = vmatprep.subr.bf16.mxu1 %v344_v20 }
 0x133   :  { %v264_v24 = vpop.f32.mrb[5].mxu0 }
 0x134   :  { %v1088_v25 = vpop.f32.mrb[6].mxu0 }
 0x135   :  { %v346_v26 = vpack.c.bf16 %v1088_v25, %v1087_v23  ;;  %v267_v27 = vpop.f32.mrb[7].mxu0  ;;  %1100 = vmatpush3.bf16.msra.mxu1 %v344_v20 }
 0x136   :  { %v345_v28 = vpack.c.bf16 %v267_v27, %v264_v24 }
 0x138   :  { %1101 = vmatprep.subr.bf16.mxu1 %v345_v28 }
 0x139   :  { %1102 = vmatpush3.bf16.msra.mxu1 %v345_v28 }
 0x13a   :  { %v1091_v29 = vpop.f32.mrb[8].mxu0  ;;  %1103 = vmatprep.subr.bf16.mxu1 %v346_v26 }
 0x13b   :  { %v280_v30 = vpop.f32.mrb[9].mxu0 }
 0x13c   :  { %v1092_v31 = vpop.f32.mrb[10].mxu0 }
 0x13d   :  { %v348_v32 = vpack.c.bf16 %v1092_v31, %v1091_v29  ;;  %v283_v33 = vpop.f32.mrb[11].mxu0  ;;  %1104 = vmatpush3.bf16.msra.mxu1 %v346_v26 }
 0x13e   :  { %v347_v34 = vpack.c.bf16 %v283_v33, %v280_v30 }
 0x140   :  { %1105 = vmatprep.subr.bf16.mxu1 %v347_v34 }
 0x141   :  { %1106 = vmatpush3.bf16.msra.mxu1 %v347_v34 }
 0x142   :  { %v1095_v35 = vpop.f32.mrb[12].mxu0  ;;  %1107 = vmatprep.subr.bf16.mxu1 %v348_v32 }
 0x143   :  { %v296_v36 = vpop.f32.mrb[13].mxu0 }
 0x144   :  { %v1096_v37 = vpop.f32.mrb[14].mxu0 }
 0x145   :  { %v350_v38 = vpack.c.bf16 %v1096_v37, %v1095_v35  ;;  %v299_v39 = vpop.f32.mrb[15].mxu0  ;;  %1108 = vmatpush3.bf16.msra.mxu1 %v348_v32 }
 0x146   :  { %v349_v40 = vpack.c.bf16 %v299_v39, %v296_v36 }
 0x148   :  { %1109 = vmatprep.subr.bf16.mxu1 %v349_v40 }
 0x149   :  { %1110 = vmatpush3.bf16.msra.mxu1 %v349_v40 }
 0x14a   :  { %1111 = vmatprep.subr.bf16.mxu1 %v350_v38 }
 0x14d   :  { %1112 = vmatpush3.bf16.msra.mxu1 %v350_v38 }
 0x150   :  { %1114 = vmatmul.mubr.bf16.vlgmr.msra.gmra.mrb[0].mxu1 %v1152_v41 }
 0x151   :  { %1117 = vmatprep.mubr.bf16.mxu1 %v1153_v42 }
 0x158   :  { %1118 = vmatmul.mubr.bf16.gmra.mrb[4].mxu1 %v1154_v43 }
 0x159   :  { %1121 = vmatprep.mubr.bf16.mxu1 %v1155_v44 }
 0x160   :  { %1122 = vmatmul.mubr.bf16.gmra.mrb[8].mxu1 %v1156_v45 }
 0x161   :  { %1125 = vmatprep.mubr.bf16.mxu1 %v1157_v46 }
 0x168   :  { %1126 = vmatmul.mubr.bf16.gmra.mrb[12].mxu1 %v1158_v47 }
 0x223   :  { %v1115_v49 = vpop.f32.mrb[0].mxu1 }
 0x224   :  { %v556_v50 = vadd.f32 %v1115_v49, %v951_v48  ;;  %v433_v51 = vpop.f32.mrb[1].mxu1 }
 0x225   :  { %v554_v52 = vadd.f32 %v951_v48, %v433_v51  ;;  %v1116_v53 = vpop.f32.mrb[2].mxu1 }
 0x226   :  { %574 = vadd.xlane.f32.xlu1 %v556_v50  ;;  %v436_v54 = vpop.f32.mrb[3].mxu1  ;;  %v557_v55 = vadd.f32 %v1116_v53, %v951_v48 }
 0x227   :  { %570 = vadd.xlane.f32.xlu0 %v554_v52  ;;  %v1381_v56 = vadd.f32 %v951_v48, %v436_v54 }
 0x22a   :  { %576 = vadd.xlane.f32.xlu1 %v557_v55 }
 0x22b   :  { %572 = vadd.xlane.f32.xlu0 %v1381_v56  ;;  %v1119_v57 = vpop.f32.mrb[4].mxu1 }
 0x22c   :  { %v1384_v58 = vadd.f32 %v1119_v57, %v951_v48  ;;  %v449_v59 = vpop.f32.mrb[5].mxu1 }
 0x22d   :  { %v1120_v60 = vpop.f32.mrb[6].mxu1  ;;  %v1390_v63 = vadd.f32 %v951_v48, %v449_v59 }
 0x22e   :  { %v1386_v61 = vadd.f32 %v1120_v60, %v951_v48  ;;  %v452_v62 = vpop.f32.mrb[7].mxu1 }
 0x22f   :  { %582 = vadd.xlane.f32.xlu0 %v1384_v58  ;;  %v1392_v0 = vadd.f32 %v951_v48, %v452_v62 }
 0x230   :  { %584 = vadd.xlane.f32.xlu1 %v1386_v61 }
 0x233   :  { %578 = vadd.xlane.f32.xlu0 %v1390_v63  ;;  %v1123_v1 = vpop.f32.mrb[8].mxu1 }
 0x234   :  { %v1395_v2 = vadd.f32 %v1123_v1, %v951_v48  ;;  %580 = vadd.xlane.f32.xlu1 %v1392_v0  ;;  %v465_v3 = vpop.f32.mrb[9].mxu1 }
 0x235   :  { %v1124_v4 = vpop.f32.mrb[10].mxu1  ;;  %v1402_v7 = vadd.f32 %v951_v48, %v465_v3 }
 0x236   :  { %v1398_v5 = vadd.f32 %v1124_v4, %v951_v48  ;;  %v468_v6 = vpop.f32.mrb[11].mxu1 }
 0x237   :  { %590 = vadd.xlane.f32.xlu0 %v1395_v2  ;;  %v1404_v8 = vadd.f32 %v951_v48, %v468_v6 }
 0x238   :  { %592 = vadd.xlane.f32.xlu1 %v1398_v5 }
 0x23b   :  { %586 = vadd.xlane.f32.xlu0 %v1402_v7  ;;  %v1127_v9 = vpop.f32.mrb[12].mxu1 }
 0x23c   :  { %588 = vadd.xlane.f32.xlu1 %v1404_v8  ;;  %v481_v10 = vpop.f32.mrb[13].mxu1  ;;  %v1413_v15 = vadd.f32 %v1127_v9, %v951_v48 }
 0x23d   :  { %v1408_v11 = vadd.f32 %v951_v48, %v481_v10  ;;  %v1128_v12 = vpop.f32.mrb[14].mxu1 }
 0x23e   :  { %v484_v13 = vpop.f32.mrb[15].mxu1  ;;  %v1416_v16 = vadd.f32 %v1128_v12, %v951_v48 }
 0x23f   :  { %v1410_v14 = vadd.f32 %v951_v48, %v484_v13  ;;  %594 = vadd.xlane.f32.xlu0 %v1408_v11 }
 0x241   :  { %596 = vadd.xlane.f32.xlu1 %v1410_v14 }
 0x243   :  { %598 = vadd.xlane.f32.xlu0 %v1413_v15 }
 0x245   :  { %600 = vadd.xlane.f32.xlu1 %v1416_v16 }
 0x2b3   :  { %v575_v19 = vpop.xlane.xlu1 %574 }
 0x2b4   :  { %v604_v20 = vmul.f32 0.03125, %v575_v19  ;;  %v571_v21 = vpop.xlane.xlu0 %570 }
 0x2b5   :  { %v602_v22 = vmul.f32 0.03125, %v571_v21 }
 0x2b6   :  { %v623_v23 = vsub.f32 %v556_v50, %v604_v20 }
 0x2b7   :  { %v621_v24 = vsub.f32 %v554_v52, %v602_v22  ;;  %v577_v25 = vpop.xlane.xlu1 %576 }
 0x2b8   :  { %v605_v26 = vmul.f32 0.03125, %v577_v25  ;;  %v573_v27 = vpop.xlane.xlu0 %572  ;;  %v1425_v28 = vsel %vm620_vm0, %v623_v23, 0.0 }
 0x2b9   :  { %v603_v29 = vmul.f32 0.03125, %v573_v27  ;;  %v657_v30 = vmul.f32 %v1425_v28, %v1425_v28  ;;  %v1431_v32 = vsel %vm620_vm0, %v621_v24, 0.0 }
 0x2ba   :  { %v624_v31 = vsub.f32 %v557_v55, %v605_v26  ;;  %v655_v38 = vmul.f32 %v1431_v32, %v1431_v32 }
 0x2bb   :  { %v622_v33 = vsub.f32 %v1381_v56, %v603_v29  ;;  %675 = vadd.xlane.f32.xlu0 %v657_v30 }
 0x2bc   :  { %v583_v34 = vpop.xlane.xlu0 %582  ;;  %v1436_v35 = vsel %vm620_vm0, %v624_v31, 0.0 }
 0x2bd   :  { %v608_v36 = vmul.f32 0.03125, %v583_v34  ;;  %v585_v37 = vpop.xlane.xlu1 %584  ;;  %v658_v39 = vmul.f32 %v1436_v35, %v1436_v35  ;;  %v1444_v41 = vsel %vm620_vm0, %v622_v33, 0.0 }
 0x2be   :  { %v609_v40 = vmul.f32 0.03125, %v585_v37  ;;  %v656_v47 = vmul.f32 %v1444_v41, %v1444_v41 }
 0x2bf   :  { %v627_v42 = vsub.f32 %v1384_v58, %v608_v36  ;;  %671 = vadd.xlane.f32.xlu0 %v655_v38  ;;  %677 = vadd.xlane.f32.xlu1 %v658_v39 }
 0x2c0   :  { %v628_v43 = vsub.f32 %v1386_v61, %v609_v40  ;;  %v579_v44 = vpop.xlane.xlu0 %578 }
 0x2c1   :  { %v606_v45 = vmul.f32 0.03125, %v579_v44  ;;  %v581_v46 = vpop.xlane.xlu1 %580  ;;  %v1452_v48 = vsel %vm620_vm0, %v627_v42, 0.0 }
 0x2c2   :  { %v607_v49 = vmul.f32 0.03125, %v581_v46  ;;  %v661_v50 = vmul.f32 %v1452_v48, %v1452_v48  ;;  %v1458_v51 = vsel %vm620_vm0, %v628_v43, 0.0 }
 0x2c3   :  { %v625_v52 = vsub.f32 %v1390_v63, %v606_v45  ;;  %673 = vadd.xlane.f32.xlu1 %v656_v47  ;;  %v662_v57 = vmul.f32 %v1458_v51, %v1458_v51 }
 0x2c4   :  { %v626_v53 = vsub.f32 %v1392_v0, %v607_v49  ;;  %v591_v54 = vpop.xlane.xlu0 %590  ;;  %683 = vadd.xlane.f32.xlu0 %v661_v50 }
 0x2c5   :  { %v612_v55 = vmul.f32 0.03125, %v591_v54  ;;  %v593_v56 = vpop.xlane.xlu1 %592  ;;  %v1466_v58 = vsel %vm620_vm0, %v625_v52, 0.0 }
 0x2c6   :  { %v613_v59 = vmul.f32 0.03125, %v593_v56  ;;  %v659_v60 = vmul.f32 %v1466_v58, %v1466_v58  ;;  %v1472_v61 = vsel %vm620_vm0, %v626_v53, 0.0 }
 0x2c7   :  { %v631_v62 = vsub.f32 %v1395_v2, %v612_v55  ;;  %685 = vadd.xlane.f32.xlu1 %v662_v57  ;;  %v660_v4 = vmul.f32 %v1472_v61, %v1472_v61 }
 0x2c8   :  { %v632_v63 = vsub.f32 %v1398_v5, %v613_v59  ;;  %v587_v0 = vpop.xlane.xlu0 %586  ;;  %679 = vadd.xlane.f32.xlu0 %v659_v60 }
 0x2c9   :  { %v610_v1 = vmul.f32 0.03125, %v587_v0  ;;  %v589_v3 = vpop.xlane.xlu1 %588  ;;  %v1480_v6 = vsel %vm620_vm0, %v631_v62, 0.0  ;;  %v1535_v0 = vld [vmem:[%s1609_s4] ss:$0 sm:$0xff]  ;;  %s1290_s4 = smov [#allocation9]  }
 0x2ca   :  { %v611_v9 = vmul.f32 0.03125, %v589_v3  ;;  %v665_v10 = vmul.f32 %v1480_v6, %v1480_v6  ;;  %v1486_v2 = vsel %vm620_vm0, %v632_v63, 0.0 }
 0x2cb   :  { %v629_v5 = vsub.f32 %v1402_v7, %v610_v1  ;;  %681 = vadd.xlane.f32.xlu1 %v660_v4  ;;  %v666_v19 = vmul.f32 %v1486_v2, %v1486_v2 }
 0x2cc   :  { %v630_v12 = vsub.f32 %v1404_v8, %v611_v9  ;;  %691 = vadd.xlane.f32.xlu0 %v665_v10  ;;  %v595_v13 = vpop.xlane.xlu0 %594 }
 0x2cd   :  { %v614_v17 = vmul.f32 0.03125, %v595_v13  ;;  %v1494_v20 = vsel %vm620_vm0, %v629_v5, 0.0 }
 0x2ce   :  { %v597_v21 = vpop.xlane.xlu1 %596  ;;  %v663_v22 = vmul.f32 %v1494_v20, %v1494_v20  ;;  %v1500_v7 = vsel %vm620_vm0, %v630_v12, 0.0 }
 0x2cf   :  { %v633_v8 = vsub.f32 %v1408_v11, %v614_v17  ;;  %v615_v23 = vmul.f32 0.03125, %v597_v21  ;;  %693 = vadd.xlane.f32.xlu1 %v666_v19  ;;  %v664_v27 = vmul.f32 %v1500_v7, %v1500_v7  ;;  %v1542_v21 = vld [vmem:[%s1610_s5] ss:$0 sm:$0xff]  ;;  %s914_s5 = sshll.u32 %s1290_s4, 4  ;;  %s915_s5 = int_to_ptr.vmem [resolvable:$true] %s914_s5 }
 0x2d0   :  { %687 = vadd.xlane.f32.xlu0 %v663_v22  ;;  %v599_v24 = vpop.xlane.xlu0 %598  ;;  %s1257_s15 = scalar_lea.vmem %s915_s5, 1024  ;;  %p1262_p11 = scmp.lt.s32.totalorder %s915_s5, %s915_s5 }
 0x2d1   :  { %v634_v25 = vsub.f32 %v1410_v14, %v615_v23  ;;  %v616_v26 = vmul.f32 0.03125, %v599_v24  ;;  %v1508_v29 = vsel %vm620_vm0, %v633_v8, 0.0  ;;  %p1258_p10 = scmp.ne.s32.totalorder %s915_s5, %s1257_s15  ;;  %p1263_p12 = scmp.lt.s32.totalorder %s1257_s15, %s1257_s15 }
 0x2d2   :  { %v601_v30 = vpop.xlane.xlu1 %600  ;;  %v667_v31 = vmul.f32 %v1508_v29, %v1508_v29 }
 0x2d3   :  { %v635_v11 = vsub.f32 %v1413_v15, %v616_v26  ;;  %v617_v33 = vmul.f32 0.03125, %v601_v30  ;;  %689 = vadd.xlane.f32.xlu1 %v664_v27  ;;  %v1515_v34 = vsel %vm620_vm0, %v634_v25, 0.0  ;;  %p1264_p13 = por %p1263_p12, %p1262_p11 }
 0x2d4   :  { %695 = vadd.xlane.f32.xlu0 %v667_v31  ;;  %v668_v14 = vmul.f32 %v1515_v34, %v1515_v34 }
 0x2d5   :  { %v636_v36 = vsub.f32 %v1416_v16, %v617_v33  ;;  %v1522_v37 = vsel %vm620_vm0, %v635_v11, 0.0  ;;  %p1265_p0 = pnand %p1264_p13, %p1258_p10 }
 0x2d6   :  { %v669_v38 = vmul.f32 %v1522_v37, %v1522_v37 }
 0x2d7   :  { %697 = vadd.xlane.f32.xlu1 %v668_v14  ;;  %v1528_v15 = vsel %vm620_vm0, %v636_v36, 0.0 }
 0x2d8   :  { %699 = vadd.xlane.f32.xlu0 %v669_v38  ;;  %v670_v39 = vmul.f32 %v1528_v15, %v1528_v15 }
 0x2db   :  { %701 = vadd.xlane.f32.xlu1 %v670_v39 }
 0x348   :  { %v676_v40 = vpop.xlane.xlu0 %675 }
 0x349   :  { %v705_v42 = vmul.f32 0.03125, %v676_v40 }
 0x34b   :  { %v721_v16 = vadd.f32 1e-05, %v705_v42 }
 0x34c   :  { %v672_v43 = vpop.xlane.xlu0 %671  ;;  %v678_v44 = vpop.xlane.xlu1 %677 }
 0x34d   :  { %1159 = vrsqrt.f32 %v721_v16  ;;  %v703_v45 = vmul.f32 0.03125, %v672_v43  ;;  %v706_v46 = vmul.f32 0.03125, %v678_v44 }
 0x34f   :  { %v719_v47 = vadd.f32 1e-05, %v703_v45  ;;  %v722_v49 = vadd.f32 1e-05, %v706_v46 }
 0x350   :  { %v674_v50 = vpop.xlane.xlu1 %673 }
 0x351   :  { %1161 = vrsqrt.f32 %v719_v47  ;;  %v704_v18 = vmul.f32 0.03125, %v674_v50  ;;  %v684_v52 = vpop.xlane.xlu0 %683 }
 0x352   :  { %1163 = vrsqrt.f32 %v722_v49  ;;  %v709_v53 = vmul.f32 0.03125, %v684_v52 }
 0x353   :  { %v720_v54 = vadd.f32 1e-05, %v704_v18 }
 0x354   :  { %v725_v55 = vadd.f32 1e-05, %v709_v53  ;;  %v686_v56 = vpop.xlane.xlu1 %685 }
 0x355   :  { %1165 = vrsqrt.f32 %v720_v54  ;;  %v710_v57 = vmul.f32 0.03125, %v686_v56  ;;  %v680_v59 = vpop.xlane.xlu0 %679 }
 0x356   :  { %1167 = vrsqrt.f32 %v725_v55  ;;  %v707_v60 = vmul.f32 0.03125, %v680_v59 }
 0x357   :  { %v1160_v62 = vpop.eup %1159  ;;  %v726_v63 = vadd.f32 1e-05, %v710_v57 }
 0x358   :  { %v753_v1 = vmul.f32 %v1160_v62, %v1425_v28  ;;  %v723_v3 = vadd.f32 1e-05, %v707_v60  ;;  %v682_v4 = vpop.xlane.xlu1 %681 }
 0x359   :  { %1169 = vrsqrt.f32 %v726_v63  ;;  %v708_v9 = vmul.f32 0.03125, %v682_v4  ;;  %v692_v10 = vpop.xlane.xlu0 %691 }
 0x35a   :  { %1171 = vrsqrt.f32 %v723_v3  ;;  %v713_v5 = vmul.f32 0.03125, %v692_v10  ;;  %v776_v13 = vmul.f32 %v1535_v0, %v753_v1 }
 0x35b   :  { %v1162_v12 = vpop.eup %1161  ;;  %v724_v17 = vadd.f32 1e-05, %v708_v9 }
 0x35c   :  { %v1164_v19 = vpop.eup %1163  ;;  %v751_v22 = vmul.f32 %v1162_v12, %v1431_v32  ;;  %v729_v28 = vadd.f32 1e-05, %v713_v5  ;;  %v694_v8 = vpop.xlane.xlu1 %693  ;;  %v799_v31 = vadd.f32 %v1542_v21, %v776_v13 }
 0x35d   :  { %v754_v23 = vmul.f32 %v1164_v19, %v1436_v35  ;;  %1173 = vrsqrt.f32 %v724_v17  ;;  %v714_v24 = vmul.f32 0.03125, %v694_v8  ;;  %v688_v25 = vpop.xlane.xlu0 %687 }
 0x35e   :  { %v774_v26 = vmul.f32 %v1535_v0, %v751_v22  ;;  %1175 = vrsqrt.f32 %v729_v28  ;;  %v711_v27 = vmul.f32 0.03125, %v688_v25  ;;  %v815_v46 = vmax.f32 %v799_v31, 0.0 }
 0x35f   :  { %v1166_v30 = vpop.eup %1165  ;;  %v777_v11 = vmul.f32 %v1535_v0, %v754_v23  ;;  %v730_v33 = vadd.f32 1e-05, %v714_v24 }
 0x360   :  { %v1168_v14 = vpop.eup %1167  ;;  %v797_v32 = vadd.f32 %v1542_v21, %v774_v26  ;;  %v752_v36 = vmul.f32 %v1166_v30, %v1444_v41  ;;  %v727_v38 = vadd.f32 1e-05, %v711_v27  ;;  %v690_v35 = vpop.xlane.xlu1 %689 }
 0x361   :  { %v800_v39 = vadd.f32 %v1542_v21, %v777_v11  ;;  %v757_v40 = vmul.f32 %v1168_v14, %v1452_v48  ;;  %1177 = vrsqrt.f32 %v730_v33  ;;  %v712_v42 = vmul.f32 0.03125, %v690_v35  ;;  %v696_v16 = vpop.xlane.xlu0 %695 }
 0x362   :  { %v775_v43 = vmul.f32 %v1535_v0, %v752_v36  ;;  %1179 = vrsqrt.f32 %v727_v38  ;;  %v715_v44 = vmul.f32 0.03125, %v696_v16  ;;  %v813_v18 = vmax.f32 %v797_v32, 0.0 }
 0x363   :  { %v1170_v45 = vpop.eup %1169  ;;  %v816_v47 = vmax.f32 %v800_v39, 0.0  ;;  %v780_v49 = vmul.f32 %v1535_v0, %v757_v40  ;;  %v728_v50 = vadd.f32 1e-05, %v712_v42 }
 0x364   :  { %v1172_v41 = vpop.eup %1171  ;;  %v798_v52 = vadd.f32 %v1542_v21, %v775_v43  ;;  %v758_v53 = vmul.f32 %v1170_v45, %v1458_v51  ;;  %v731_v48 = vadd.f32 1e-05, %v715_v44  ;;  %v698_v54 = vpop.xlane.xlu1 %697 }
 0x365   :  { %v994_v55 = vpack.c.bf16 %v816_v47, %v815_v46  ;;  %v803_v56 = vadd.f32 %v1542_v21, %v780_v49  ;;  %v755_v57 = vmul.f32 %v1172_v41, %v1466_v58  ;;  %1181 = vrsqrt.f32 %v728_v50  ;;  %v700_v59 = vpop.xlane.xlu0 %699 }
 0x366   :  { %v814_v60 = vmax.f32 %v798_v52, 0.0  ;;  %v781_v62 = vmul.f32 %v1535_v0, %v758_v53  ;;  %1183 = vrsqrt.f32 %v731_v48  ;;  %v716_v63 = vmul.f32 0.03125, %v698_v54 }
 0x367   :  { %v1174_v1 = vpop.eup %1173  ;;  %1026 = vst [vmem:[#allocation9 + $0x8] sm:$0xff] %v994_v55   ;;  %v778_v3 = vmul.f32 %v1535_v0, %v755_v57  ;;  %v717_v4 = vmul.f32 0.03125, %v700_v59  ;;  %v819_v13 = vmax.f32 %v803_v56, 0.0 }
 0x368   :  { %v1176_v51 = vpop.eup %1175  ;;  %v989_v9 = vpack.c.bf16 %v814_v60, %v813_v18  ;;  %v804_v10 = vadd.f32 %v1542_v21, %v781_v62  ;;  %v756_v5 = vmul.f32 %v1174_v1, %v1472_v61  ;;  %v732_v12 = vadd.f32 1e-05, %v716_v63  ;;  %v702_v58 = vpop.xlane.xlu1 %701 }
 0x369   :  { %v761_v17 = vmul.f32 %v1176_v51, %v1480_v6  ;;  %v733_v19 = vadd.f32 1e-05, %v717_v4  ;;  %v718_v22 = vmul.f32 0.03125, %v702_v58  ;;  %v801_v8 = vadd.f32 %v1542_v21, %v778_v3 }
 0x36a   :  { %990 = vst [vmem:[#allocation9] sm:$0xff] %v989_v9   ;;  %v820_v28 = vmax.f32 %v804_v10, 0.0  ;;  %v779_v23 = vmul.f32 %v1535_v0, %v756_v5  ;;  %1185 = vrsqrt.f32 %v732_v12 }
 0x36b   :  { %v1178_v24 = vpop.eup %1177  ;;  %v784_v25 = vmul.f32 %v1535_v0, %v761_v17  ;;  %1187 = vrsqrt.f32 %v733_v19  ;;  %v734_v26 = vadd.f32 1e-05, %v718_v22  ;;  %v817_v11 = vmax.f32 %v801_v8, 0.0 }
 0x36c   :  { %v1180_v61 = vpop.eup %1179  ;;  %v1004_v27 = vpack.c.bf16 %v820_v28, %v819_v13  ;;  %v802_v30 = vadd.f32 %v1542_v21, %v779_v23  ;;  %v762_v6 = vmul.f32 %v1178_v24, %v1486_v2 }
 0x36d   :  { %v759_v31 = vmul.f32 %v1180_v61, %v1494_v20  ;;  %1189 = vrsqrt.f32 %v734_v26  ;;  %v807_v14 = vadd.f32 %v1542_v21, %v784_v25 }
 0x36e   :  { %1028 = vst [vmem:[#allocation9 + $0x18] sm:$0xff] %v1004_v27   ;;  %v818_v33 = vmax.f32 %v802_v30, 0.0  ;;  %v785_v32 = vmul.f32 %v1535_v0, %v762_v6 }
 0x36f   :  { %v1182_v36 = vpop.eup %1181  ;;  %v782_v38 = vmul.f32 %v1535_v0, %v759_v31  ;;  %v823_v20 = vmax.f32 %v807_v14, 0.0 }
 0x370   :  { %v1184_v35 = vpop.eup %1183  ;;  %v999_v39 = vpack.c.bf16 %v818_v33, %v817_v11  ;;  %v808_v40 = vadd.f32 %v1542_v21, %v785_v32  ;;  %v760_v42 = vmul.f32 %v1182_v36, %v1500_v7 }
 0x371   :  { %v763_v2 = vmul.f32 %v1184_v35, %v1508_v29  ;;  %v805_v43 = vadd.f32 %v1542_v21, %v782_v38 }
 0x372   :  { %1027 = vst [vmem:[#allocation9 + $0x10] sm:$0xff] %v999_v39   ;;  %v824_v16 = vmax.f32 %v808_v40, 0.0  ;;  %v783_v44 = vmul.f32 %v1535_v0, %v760_v42 }
 0x373   :  { %v786_v45 = vmul.f32 %v1535_v0, %v763_v2  ;;  %v821_v7 = vmax.f32 %v805_v43, 0.0 }
 0x374   :  { %v1186_v46 = vpop.eup %1185  ;;  %v1014_v47 = vpack.c.bf16 %v824_v16, %v823_v20  ;;  %v806_v49 = vadd.f32 %v1542_v21, %v783_v44 }
 0x375   :  { %v1188_v50 = vpop.eup %1187  ;;  %v764_v41 = vmul.f32 %v1186_v46, %v1515_v34  ;;  %v809_v53 = vadd.f32 %v1542_v21, %v786_v45 }
 0x376   :  { %1030 = vst [vmem:[#allocation9 + $0x28] sm:$0xff] %v1014_v47   ;;  %v822_v18 = vmax.f32 %v806_v49, 0.0  ;;  %v765_v29 = vmul.f32 %v1188_v50, %v1522_v37 }
 0x377   :  { %v1190_v52 = vpop.eup %1189  ;;  %v787_v48 = vmul.f32 %v1535_v0, %v764_v41  ;;  %v825_v60 = vmax.f32 %v809_v53, 0.0 }
 0x378   :  { %v1009_v54 = vpack.c.bf16 %v822_v18, %v821_v7  ;;  %v788_v55 = vmul.f32 %v1535_v0, %v765_v29  ;;  %v766_v56 = vmul.f32 %v1190_v52, %v1528_v15 }
 0x379   :  { %v810_v57 = vadd.f32 %v1542_v21, %v787_v48 }
 0x37a   :  { %1029 = vst [vmem:[#allocation9 + $0x20] sm:$0xff] %v1009_v54   ;;  %v811_v34 = vadd.f32 %v1542_v21, %v788_v55  ;;  %v789_v59 = vmul.f32 %v1535_v0, %v766_v56 }
 0x37b   :  { %v826_v62 = vmax.f32 %v810_v57, 0.0 }
 0x37c   :  { %v812_v37 = vadd.f32 %v1542_v21, %v789_v59  ;;  %v827_v1 = vmax.f32 %v811_v34, 0.0 }
 0x37d   :  { %v1019_v63 = vpack.c.bf16 %v826_v62, %v825_v60 }
 0x37e   :  { %v828_v3 = vmax.f32 %v812_v37, 0.0 }
 0x37f   :  { %1031 = vst [vmem:[#allocation9 + $0x30] sm:$0xff] %v1019_v63  }
 0x380   :  { %v1024_v4 = vpack.c.bf16 %v828_v3, %v827_v1 }
 0x382   :  { %1032 = vst [vmem:[#allocation9 + $0x38] sm:$0xff] %v1024_v4  }
 0x383   :  { %1268 = shalt.err (!%p1265_p0)
}
 0x384   :  { %s1269_s18 = scalar_lea.hbm %s1611_s6, 1024 }
 0x385   :  { %p1270_p1 = scmp.ne.s32.totalorder %s1611_s6, %s1269_s18  ;;  %p1273_p2 = scmp.lt.u32.totalorder %s1269_s18, %s1611_s6 }
 0x387   :  { %p1275_p3 = pnand %p1273_p2, %p1270_p1 }
 0x389   :  { %1278 = shalt.err (!%p1275_p3)
}
 0x38a   :  { %920 = dma.vmem_to_hbm [thread:$0]  %s915_s5, 1024, %s1611_s6, [#allocation5], %s1287_s9, %s1287_s9, %s1288_s10  }
 0x38b   :  { %1283 = dma.done.wait [#allocation5], 1024  }
 0x38c   :  { %1284 = vsyncadd [#allocation5], 4294966272 }
 0x38d   :  { %924 = vsyncpa [#allocation4], 1 }
 0x38e   :  { %925 = vsyncpa [#allocation7], 1 }
 0x38f   :  { %926 = vsyncpa [#allocation5], 1 }

</bundles_post_ra>
